<compile_context>
chip_gen: v7x
topology: tpu7x:2x2x1
jax: 0.10.0
libtpu: 0.0.40
codegen_flags: <defaults>
</compile_context>

<pallas_src>
import jax
import jax.numpy as jnp
from jax.experimental import pallas as pl
from jax.experimental.pallas import tpu as pltpu

LANE = 128


def _round_up(x, m):
    return (x + m - 1) // m * m


def _cdiv(a, b):
    return (a + b - 1) // b


def _mlp_kernel(x_ref, w1_ref, b1_ref, w2_ref, b2_ref, w3_ref, b3_ref,
                mid_ref, out_ref):
    # layer1 first Linear (bn2 + weight_norm folded into w1/b1); Dropouts are
    # identity in eval mode.  K = dim_in stays narrow (48) on purpose.
    h = jnp.dot(x_ref[...], w1_ref[...], preferred_element_type=jnp.float32)
    h = jnp.maximum(h + b1_ref[...], 0.0)            # ReLU

    # layer1 second Linear (bn1 folded into w2/b2); middle_feat is pre-ReLU.
    mid = jnp.dot(h.astype(w2_ref.dtype), w2_ref[...],
                  preferred_element_type=jnp.float32) + b2_ref[...]
    mid_ref[...] = mid.astype(mid_ref.dtype)         # bf16 store (halves writeback)

    # layer2: ReLU -> weight_norm Linear
    o = jnp.maximum(mid, 0.0).astype(w3_ref.dtype)
    out_ref[...] = (jnp.dot(o, w3_ref[...], preferred_element_type=jnp.float32)
                    + b3_ref[...]).astype(out_ref.dtype)


def fold_and_pad_params(params, eps=1e-5, compute_dtype=jnp.bfloat16):
    """Fold weight_norm + eval-mode BatchNorms into plain (in, out) matrices,
    zero-pad output-feature dims to 128 lanes, cast weights to compute dtype.
    Run once per weight update; the result feeds the per-batch forward."""
    def wn(v, g):  # v: (out, in), g: (out, 1) -> W with ||row|| = g (PyTorch dim=0)
        return g * v / jnp.sqrt(jnp.sum(v * v, axis=1, keepdims=True))

    w1 = wn(params["w1_v"], params["w1_g"])           # (h1, dim_in)
    w2 = wn(params["w2_v"], params["w2_g"])           # (h2, h1)
    w3 = wn(params["w3_v"], params["w3_g"])           # (n_out, h2)

    # BatchNorm1d(dim_in) eval:  y = x*s2 + t2
    s2 = params["bn2_gamma"] / jnp.sqrt(params["bn2_var"] + eps)
    t2 = params["bn2_beta"] - params["bn2_mean"] * s2
    # BatchNorm1d(h1) eval:      y = h*s1 + t1
    s1 = params["bn1_gamma"] / jnp.sqrt(params["bn1_var"] + eps)
    t1 = params["bn1_beta"] - params["bn1_mean"] * s1

    # Fold bn2 into layer-1's first Linear: (x*s2 + t2) @ W1.T + b1
    w1t = s2[:, None] * w1.T                          # (dim_in, h1)
    b1f = t2 @ w1.T + params["b1"]                    # (h1,)
    # Fold bn1 into layer-1's second Linear: (relu(h)*s1 + t1) @ W2.T + b2
    w2t = s1[:, None] * w2.T                          # (h1, h2)
    b2f = t1 @ w2.T + params["b2"]                    # (h2,)
    w3t = w3.T                                        # (h2, n_out)
    b3f = params["b3"]

    dim_in, h1 = w1t.shape
    h2 = w2t.shape[1]
    n_out = w3t.shape[1]
    # Pad output-feature (N) dims to 128 lanes; keep contraction dim K = dim_in
    # narrow (padding K only inflates reads in this write-dominated regime).
    h1p, h2p, n_outp = (_round_up(d, LANE) for d in (h1, h2, n_out))

    def pad2(a, shape):
        return jnp.zeros(shape, a.dtype).at[: a.shape[0], : a.shape[1]].set(a)

    folded = dict(
        w1=pad2(w1t, (dim_in, h1p)).astype(compute_dtype),
        b1=pad2(b1f[None, :], (1, h1p)),              # biases stay f32 (added to f32 acc)
        w2=pad2(w2t, (h1p, h2p)).astype(compute_dtype),
        b2=pad2(b2f[None, :], (1, h2p)),
        w3=pad2(w3t, (h2p, n_outp)).astype(compute_dtype),
        b3=pad2(b3f[None, :], (1, n_outp)),
    )
    shapes = dict(dim_in=dim_in, h2=h2, n_out=n_out)
    return folded, shapes


def mlp_2hl_weight_norm_forward(x, lower_f, folded, *, h2, n_out,
                                compute_dtype=jnp.bfloat16):
    """Batch-tiled fused forward.  `folded` comes from fold_and_pad_params."""
    B = x.shape[0]
    xc = jnp.concatenate([x, lower_f], axis=1).astype(compute_dtype)
    dim_in = xc.shape[1]

    # Batch tile: large (amortize ~0.35 us/step overhead), multiple of 16 (bf16
    # sublane packing), and once B > 32 always an even number (>=2) of grid
    # steps so both v7x TensorCores are used with no tail imbalance.
    cap = 2048
    if B > 32:
        n_tiles = max(2, 2 * _cdiv(B, 2 * cap))       # even, each tile <= cap
        tb = _round_up(_cdiv(B, n_tiles), 16)
    else:
        tb = min(cap, _round_up(B, 16))
    b_pad = _round_up(B, tb)

    if b_pad == B:
        xp = xc                                       # no extra pad copy
    else:
        xp = jnp.zeros((b_pad, dim_in), compute_dtype).at[:B].set(xc)

    h1p = folded["w1"].shape[1]
    h2p = folded["w2"].shape[1]
    n_outp = folded["w3"].shape[1]

    row = lambda shape: pl.BlockSpec(shape, lambda i: (i, 0))   # batch-tiled operands
    rep = lambda shape: pl.BlockSpec(shape, lambda i: (0, 0))   # resident weights/biases

    mid_p, out_p = pl.pallas_call(
        _mlp_kernel,
        out_shape=(jax.ShapeDtypeStruct((b_pad, h2p), compute_dtype),
                   jax.ShapeDtypeStruct((b_pad, n_outp), compute_dtype)),
        grid=(b_pad // tb,),
        in_specs=[
            row((tb, dim_in)),
            rep(folded["w1"].shape), rep((1, h1p)),
            rep((h1p, h2p)), rep((1, h2p)),
            rep((h2p, n_outp)), rep((1, n_outp)),
        ],
        out_specs=(row((tb, h2p)), row((tb, n_outp))),
        compiler_params=pltpu.CompilerParams(dimension_semantics=("parallel",)),
    )(xp, folded["w1"], folded["b1"], folded["w2"], folded["b2"],
      folded["w3"], folded["b3"])

    return mid_p[:B, :h2], out_p[:B, :n_out]


def _init_params(key, dim_in, h1, h2, n_targets):
    """Deterministic synthetic parameter init (PyTorch-like shapes)."""
    ks = jax.random.split(key, 8)
    p = {}
    p["w1_v"] = jax.random.normal(ks[0], (h1, dim_in), jnp.float32) * 0.1
    p["w1_g"] = jnp.ones((h1, 1), jnp.float32) * 0.9
    p["b1"] = jax.random.normal(ks[1], (h1,), jnp.float32) * 0.05
    p["w2_v"] = jax.random.normal(ks[2], (h2, h1), jnp.float32) * 0.1
    p["w2_g"] = jnp.ones((h2, 1), jnp.float32) * 1.1
    p["b2"] = jax.random.normal(ks[3], (h2,), jnp.float32) * 0.05
    p["w3_v"] = jax.random.normal(ks[4], (n_targets, h2), jnp.float32) * 0.1
    p["w3_g"] = jnp.ones((n_targets, 1), jnp.float32)
    p["b3"] = jax.random.normal(ks[5], (n_targets,), jnp.float32) * 0.05
    p["bn2_gamma"] = jnp.ones((dim_in,), jnp.float32)
    p["bn2_beta"] = jnp.zeros((dim_in,), jnp.float32)
    p["bn2_mean"] = jax.random.normal(ks[6], (dim_in,), jnp.float32) * 0.1
    p["bn2_var"] = jnp.ones((dim_in,), jnp.float32) * 1.2
    p["bn1_gamma"] = jnp.ones((h1,), jnp.float32) * 1.05
    p["bn1_beta"] = jnp.zeros((h1,), jnp.float32) + 0.01
    p["bn1_mean"] = jax.random.normal(ks[7], (h1,), jnp.float32) * 0.1
    p["bn1_var"] = jnp.ones((h1,), jnp.float32) * 0.8
    return p


def _reference(x, lower_f, params):
    """Pure-JAX f32 reference mirroring the PyTorch eval-mode forward."""
    eps = 1e-5
    xc = jnp.concatenate([x, lower_f], axis=1)
    xc = (xc - params["bn2_mean"]) / jnp.sqrt(params["bn2_var"] + eps) \
        * params["bn2_gamma"] + params["bn2_beta"]

    def wn(v, g):
        return g * v / jnp.sqrt(jnp.sum(v * v, axis=1, keepdims=True))

    h = xc @ wn(params["w1_v"], params["w1_g"]).T + params["b1"]
    h = jnp.maximum(h, 0.0)
    h = (h - params["bn1_mean"]) / jnp.sqrt(params["bn1_var"] + eps) \
        * params["bn1_gamma"] + params["bn1_beta"]
    mid = h @ wn(params["w2_v"], params["w2_g"]).T + params["b2"]
    out = jnp.maximum(mid, 0.0) @ wn(params["w3_v"], params["w3_g"]).T + params["b3"]
    return mid, out


if __name__ == "__main__":
    # Small GrowNet-style shapes: feat_d=16, hidden_size=32 (lower_f from previous
    # weak learner), dim_in = 48, n_targets = 8.
    B, feat_d, hidden, n_targets = 8, 16, 32, 8
    key = jax.random.PRNGKey(0)
    kx, kl, kp = jax.random.split(key, 3)

    x = jax.random.normal(kx, (B, feat_d), jnp.float32)
    lower_f = jax.random.normal(kl, (B, hidden), jnp.float32)
    params = _init_params(kp, feat_d + hidden, hidden, hidden, n_targets)

    # Fold/pad once (per weight update); jit the per-batch forward.
    folded, shp = fold_and_pad_params(params)
    fwd = jax.jit(mlp_2hl_weight_norm_forward, static_argnames=("h2", "n_out"))
    mid, out = fwd(x, lower_f, folded, h2=shp["h2"], n_out=shp["n_out"])
    jax.block_until_ready((mid, out))

    mid_ref, out_ref = _reference(x, lower_f, params)
    assert mid.shape == (B, hidden) and out.shape == (B, n_targets)
    # bf16 operands + bf16 output stores with f32 accumulation -> loosened tolerance.
    assert jnp.allclose(mid.astype(jnp.float32), mid_ref, atol=5e-2, rtol=5e-2)
    assert jnp.allclose(out.astype(jnp.float32), out_ref, atol=5e-2, rtol=5e-2)

    print("KERNEL_OK")
</pallas_src>

<mosaic_0001>
module attributes {stable_mosaic.version = 11 : i64} {
  func.func @_mlp_kernel(%arg0: i32, %arg1: memref<16x48xbf16, #tpu.memory_space<vmem>>, %arg2: memref<48x128xbf16, #tpu.memory_space<vmem>>, %arg3: memref<1x128xf32, #tpu.memory_space<vmem>>, %arg4: memref<128x128xbf16, #tpu.memory_space<vmem>>, %arg5: memref<1x128xf32, #tpu.memory_space<vmem>>, %arg6: memref<128x128xbf16, #tpu.memory_space<vmem>>, %arg7: memref<1x128xf32, #tpu.memory_space<vmem>>, %arg8: memref<16x128xbf16, #tpu.memory_space<vmem>>, %arg9: memref<16x128xbf16, #tpu.memory_space<vmem>>) attributes {dimension_semantics = [#tpu.dimension_semantics<parallel>], iteration_bounds = array<i64: 1>, scalar_prefetch = 0 : i64, scratch_operands = 0 : i64, tpu.core_type = #tpu.core_type<tc>, window_params = [{transform_indices = @transform_0, window_bounds = array<i64: 16, 48>}, {pipeline_mode = #tpu.pipeline_mode<synchronous>, transform_indices = @transform_1, window_bounds = array<i64: 48, 128>}, {pipeline_mode = #tpu.pipeline_mode<synchronous>, transform_indices = @transform_2, window_bounds = array<i64: 1, 128>}, {pipeline_mode = #tpu.pipeline_mode<synchronous>, transform_indices = @transform_3, window_bounds = array<i64: 128, 128>}, {pipeline_mode = #tpu.pipeline_mode<synchronous>, transform_indices = @transform_4, window_bounds = array<i64: 1, 128>}, {pipeline_mode = #tpu.pipeline_mode<synchronous>, transform_indices = @transform_5, window_bounds = array<i64: 128, 128>}, {pipeline_mode = #tpu.pipeline_mode<synchronous>, transform_indices = @transform_6, window_bounds = array<i64: 1, 128>}, {transform_indices = @transform_7, window_bounds = array<i64: 16, 128>}, {transform_indices = @transform_8, window_bounds = array<i64: 16, 128>}]} {
    %c0 = arith.constant 0 : index
    %c0_0 = arith.constant 0 : index
    %0 = vector.load %arg1[%c0, %c0_0] : memref<16x48xbf16, #tpu.memory_space<vmem>>, vector<16x48xbf16>
    %c0_1 = arith.constant 0 : index
    %c0_2 = arith.constant 0 : index
    %1 = vector.load %arg2[%c0_1, %c0_2] : memref<48x128xbf16, #tpu.memory_space<vmem>>, vector<48x128xbf16>
    %cst = arith.constant dense<0.000000e+00> : vector<16x128xf32>
    %2 = tpu.matmul %0, %1, %cst {dimension_numbers = #tpu.dot_dimension_numbers<[1], [0], [0], [1], [0, 0, 1, 1], [], []>} : vector<16x48xbf16>, vector<48x128xbf16>, vector<16x128xf32> -> vector<16x128xf32>
    %c0_3 = arith.constant 0 : index
    %c0_4 = arith.constant 0 : index
    %3 = vector.load %arg3[%c0_3, %c0_4] : memref<1x128xf32, #tpu.memory_space<vmem>>, vector<1x128xf32>
    %4 = vector.broadcast %3 : vector<1x128xf32> to vector<16x128xf32>
    %5 = arith.addf %2, %4 : vector<16x128xf32>
    %cst_5 = arith.constant 0.000000e+00 : f32
    %6 = vector.broadcast %cst_5 : f32 to vector<16x128xf32>
    %7 = arith.maximumf %5, %6 : vector<16x128xf32>
    %8 = arith.truncf %7 : vector<16x128xf32> to vector<16x128xbf16>
    %c0_6 = arith.constant 0 : index
    %c0_7 = arith.constant 0 : index
    %9 = vector.load %arg4[%c0_6, %c0_7] : memref<128x128xbf16, #tpu.memory_space<vmem>>, vector<128x128xbf16>
    %cst_8 = arith.constant dense<0.000000e+00> : vector<16x128xf32>
    %10 = tpu.matmul %8, %9, %cst_8 {dimension_numbers = #tpu.dot_dimension_numbers<[1], [0], [0], [1], [0, 0, 1, 1], [], []>} : vector<16x128xbf16>, vector<128x128xbf16>, vector<16x128xf32> -> vector<16x128xf32>
    %c0_9 = arith.constant 0 : index
    %c0_10 = arith.constant 0 : index
    %11 = vector.load %arg5[%c0_9, %c0_10] : memref<1x128xf32, #tpu.memory_space<vmem>>, vector<1x128xf32>
    %12 = vector.broadcast %11 : vector<1x128xf32> to vector<16x128xf32>
    %13 = arith.addf %10, %12 : vector<16x128xf32>
    %14 = arith.truncf %13 : vector<16x128xf32> to vector<16x128xbf16>
    %c0_11 = arith.constant 0 : index
    %c0_12 = arith.constant 0 : index
    %15 = vector.load %arg8[%c0_11, %c0_12] : memref<16x128xbf16, #tpu.memory_space<vmem>>, vector<16x128xbf16>
    tpu.vector_store %arg8[%c0_11, %c0_12], %14 {strides = array<i32>} : memref<16x128xbf16, #tpu.memory_space<vmem>>, vector<16x128xbf16>,
    %cst_13 = arith.constant 0.000000e+00 : f32
    %16 = vector.broadcast %cst_13 : f32 to vector<16x128xf32>
    %17 = arith.maximumf %13, %16 : vector<16x128xf32>
    %18 = arith.truncf %17 : vector<16x128xf32> to vector<16x128xbf16>
    %c0_14 = arith.constant 0 : index
    %c0_15 = arith.constant 0 : index
    %19 = vector.load %arg6[%c0_14, %c0_15] : memref<128x128xbf16, #tpu.memory_space<vmem>>, vector<128x128xbf16>
    %cst_16 = arith.constant dense<0.000000e+00> : vector<16x128xf32>
    %20 = tpu.matmul %18, %19, %cst_16 {dimension_numbers = #tpu.dot_dimension_numbers<[1], [0], [0], [1], [0, 0, 1, 1], [], []>} : vector<16x128xbf16>, vector<128x128xbf16>, vector<16x128xf32> -> vector<16x128xf32>
    %c0_17 = arith.constant 0 : index
    %c0_18 = arith.constant 0 : index
    %21 = vector.load %arg7[%c0_17, %c0_18] : memref<1x128xf32, #tpu.memory_space<vmem>>, vector<1x128xf32>
    %22 = vector.broadcast %21 : vector<1x128xf32> to vector<16x128xf32>
    %23 = arith.addf %20, %22 : vector<16x128xf32>
    %24 = arith.truncf %23 : vector<16x128xf32> to vector<16x128xbf16>
    %c0_19 = arith.constant 0 : index
    %c0_20 = arith.constant 0 : index
    %25 = vector.load %arg9[%c0_19, %c0_20] : memref<16x128xbf16, #tpu.memory_space<vmem>>, vector<16x128xbf16>
    tpu.vector_store %arg9[%c0_19, %c0_20], %24 {strides = array<i32>} : memref<16x128xbf16, #tpu.memory_space<vmem>>, vector<16x128xbf16>,
    return
  }
  func.func @transform_0(%arg0: i32) -> (i32, i32) {
    %c0_i32 = arith.constant 0 : i32
    %c0_i32_0 = arith.constant 0 : i32
    return %arg0, %c0_i32 : i32, i32
  }
  func.func @transform_1(%arg0: i32) -> (i32, i32) {
    %c0_i32 = arith.constant 0 : i32
    %c0_i32_0 = arith.constant 0 : i32
    %c0_i32_1 = arith.constant 0 : i32
    return %c0_i32, %c0_i32_0 : i32, i32
  }
  func.func @transform_2(%arg0: i32) -> (i32, i32) {
    %c0_i32 = arith.constant 0 : i32
    %c0_i32_0 = arith.constant 0 : i32
    %c0_i32_1 = arith.constant 0 : i32
    return %c0_i32, %c0_i32_0 : i32, i32
  }
  func.func @transform_3(%arg0: i32) -> (i32, i32) {
    %c0_i32 = arith.constant 0 : i32
    %c0_i32_0 = arith.constant 0 : i32
    %c0_i32_1 = arith.constant 0 : i32
    return %c0_i32, %c0_i32_0 : i32, i32
  }
  func.func @transform_4(%arg0: i32) -> (i32, i32) {
    %c0_i32 = arith.constant 0 : i32
    %c0_i32_0 = arith.constant 0 : i32
    %c0_i32_1 = arith.constant 0 : i32
    return %c0_i32, %c0_i32_0 : i32, i32
  }
  func.func @transform_5(%arg0: i32) -> (i32, i32) {
    %c0_i32 = arith.constant 0 : i32
    %c0_i32_0 = arith.constant 0 : i32
    %c0_i32_1 = arith.constant 0 : i32
    return %c0_i32, %c0_i32_0 : i32, i32
  }
  func.func @transform_6(%arg0: i32) -> (i32, i32) {
    %c0_i32 = arith.constant 0 : i32
    %c0_i32_0 = arith.constant 0 : i32
    %c0_i32_1 = arith.constant 0 : i32
    return %c0_i32, %c0_i32_0 : i32, i32
  }
  func.func @transform_7(%arg0: i32) -> (i32, i32) {
    %c0_i32 = arith.constant 0 : i32
    %c0_i32_0 = arith.constant 0 : i32
    return %arg0, %c0_i32 : i32, i32
  }
  func.func @transform_8(%arg0: i32) -> (i32, i32) {
    %c0_i32 = arith.constant 0 : i32
    %c0_i32_0 = arith.constant 0 : i32
    return %arg0, %c0_i32 : i32, i32
  }
}

</mosaic_0001>

<bundles_post_ra>
// kernel: mlp_2hl_weight_norm_forward.1
= control target key start
LH: loop header
LB: loop body
LE: loop exit
PB: predicated region body
PF: predicated region fallthrough
CT: control target
= control target key end

     0   :  { %14 = vsyncpa [#allocation3], 0  ;;  %s781_s0 = inlined_call_operand.vmem [shape: bf16[16,48], index: 0, kind: input, shape index: {}]   ;;  %s782_s1 = inlined_call_operand.hbm [shape: bf16[48,128], index: 1, kind: input, shape index: {}]   ;;  %s783_s2 = inlined_call_operand.vmem [shape: f32[1,128], index: 2, kind: input, shape index: {}]   ;;  %s784_s3 = inlined_call_operand.hbm [shape: bf16[128,128], index: 3, kind: input, shape index: {}]   ;;  %s785_s4 = inlined_call_operand.vmem [shape: f32[1,128], index: 4, kind: input, shape index: {}]   ;;  %s786_s5 = inlined_call_operand.vmem [shape: bf16[128,128], index: 5, kind: input, shape index: {}]   ;;  %s787_s6 = inlined_call_operand.hbm [shape: f32[1,128], index: 6, kind: input, shape index: {}]   ;;  %s788_s7 = inlined_call_operand.vmem [shape: bf16[16,128], index: 7, kind: output, shape index: {0}]   ;;  %s789_s8 = inlined_call_operand.vmem [shape: bf16[16,128], index: 8, kind: output, shape index: {1}]  }
   0x1   :  { %15 = vsyncpa [#allocation5], 0  ;;  %s622_s27 = smov [#allocation4]   ;;  %s623_s29 = smov [#allocation2]  }
   0x2   :  { %s37_s28 = sshll.u32 %s622_s27, 4  ;;  %s23_s30 = sshll.u32 %s623_s29, 4  ;;  %s38_s28 = int_to_ptr.vmem [resolvable:$true] %s37_s28  ;;  %s674_s30 = int_to_ptr.vmem [resolvable:$true] %s23_s30 }
   0x3   :  { %s552_s11 = scalar_lea.hbm %s784_s3, 1024 }
   0x4   :  { %p553_p0 = scmp.ne.s32.totalorder %s784_s3, %s552_s11  ;;  %p556_p1 = scmp.lt.u32.totalorder %s552_s11, %s784_s3 }
   0x6   :  { %p558_p2 = pnand %p556_p1, %p553_p0 }
   0x8   :  { %561 = shalt.err (!%p558_p2)
}
   0x9   :  { %s562_s16 = scalar_lea.vmem %s38_s28, 1024  ;;  %p567_p4 = scmp.lt.s32.totalorder %s38_s28, %s38_s28 }
   0xa   :  { %p563_p3 = scmp.ne.s32.totalorder %s38_s28, %s562_s16  ;;  %p568_p5 = scmp.lt.s32.totalorder %s562_s16, %s562_s16 }
   0xc   :  { %p569_p6 = por %p568_p5, %p567_p4 }
   0xe   :  { %p570_p7 = pnand %p569_p6, %p563_p3 }
  0x10   :  { %573 = shalt.err (!%p570_p7)
}
  0x11   :  { %s624_s17 = smov 64   ;;  %s625_s18 = smov 4  }
  0x12   :  { %43 = dma.hbm_to_vmem [thread:$0]  %s784_s3, 1024, %s38_s28, [#allocation5], %s624_s17, %s624_s17, %s625_s18  }
  0x13   :  { %s574_s23 = scalar_lea.hbm %s782_s1, 384 }
  0x14   :  { %p575_p8 = scmp.ne.s32.totalorder %s782_s1, %s574_s23  ;;  %p578_p9 = scmp.lt.u32.totalorder %s574_s23, %s782_s1 }
  0x16   :  { %p580_p10 = pnand %p578_p9, %p575_p8 }
  0x18   :  { %583 = shalt.err (!%p580_p10)
}
  0x19   :  { %s584_s29 = scalar_lea.vmem %s674_s30, 384  ;;  %p589_p12 = scmp.lt.s32.totalorder %s674_s30, %s674_s30 }
  0x1a   :  { %p585_p11 = scmp.ne.s32.totalorder %s674_s30, %s584_s29  ;;  %p590_p13 = scmp.lt.s32.totalorder %s584_s29, %s584_s29 }
  0x1c   :  { %p591_p0 = por %p590_p13, %p589_p12 }
  0x1e   :  { %p592_p1 = pnand %p591_p0, %p585_p11 }
  0x20   :  { %595 = shalt.err (!%p592_p1)
}
  0x21   :  { %29 = dma.hbm_to_vmem [thread:$0]  %s782_s1, 384, %s674_s30, [#allocation3], %s624_s17, %s624_s17, %s625_s18  }
  0x22   :  { %s626_s9 = smov [#allocation6]   ;;  %s596_s13 = scalar_lea.hbm %s787_s6, 16 }
  0x23   :  { %s54_s10 = sshll.u32 %s626_s9, 4  ;;  %p597_p2 = scmp.ne.s32.totalorder %s787_s6, %s596_s13  ;;  %s55_s10 = int_to_ptr.vmem [resolvable:$true] %s54_s10 }
  0x24   :  { %p600_p3 = scmp.lt.u32.totalorder %s596_s13, %s787_s6 }
  0x26   :  { %p602_p4 = pnand %p600_p3, %p597_p2 }
  0x28   :  { %605 = shalt.err (!%p602_p4)
}
  0x29   :  { %s606_s20 = scalar_lea.vmem %s55_s10, 16  ;;  %s610_s1 = scalar_lea.vmem %s55_s10, 32 }
  0x2a   :  { %p607_p5 = scmp.ne.s32.totalorder %s55_s10, %s606_s20  ;;  %p611_p6 = scmp.lt.s32.totalorder %s55_s10, %s55_s10 }
  0x2b   :  { %p612_p7 = scmp.lt.s32.totalorder %s610_s1, %s606_s20 }
  0x2d   :  { %p613_p8 = por %p612_p7, %p611_p6 }
  0x2f   :  { %p614_p9 = pnand %p613_p8, %p607_p5 }
  0x31   :  { %617 = shalt.err (!%p614_p9)
}
  0x32   :  { %57 = dma.hbm_to_vmem [thread:$0]  %s787_s6, 16, %s55_s10, [#allocation5]  }
  0x33   :  { %618 = dma.done.wait [#allocation3], 384  }
  0x34   :  { %619 = vsyncadd [#allocation3], 4294966912 }
  0x35   :  { %620 = dma.done.wait [#allocation5], 1040  }
  0x36   :  { %621 = vsyncadd [#allocation5], 4294966256  ;;  %v627_v0 = vmov 0.0   ;;  %vm628_vm0 = vmmov 0   ;;  %v532_v1 = vld [vmem:[#allocation2] sm:$0xff]   ;;  %v533_v2 = vld [vmem:[#allocation2 + $0x8] sm:$0xff]  }
  0x37   :  { %475 = vmatprep.subr.bf16.mxu0 %v627_v0  ;;  %481 = vmatprep.mubr.msk.bf16.mxu0 %vm628_vm0, %v627_v0  ;;  %v536_v3 = vld [vmem:[#allocation4] sm:$0xff]   ;;  %v534_v4 = vld [vmem:[#allocation2 + $0x10] sm:$0xff]   ;;  %v537_v5 = vld [vmem:[#allocation4 + $0x8] sm:$0xff]   ;;  %vm106_vm1 = vcmask 392192  }
  0x38   :  { %485 = vmatprep.subr.bf16.mxu1 %v627_v0  ;;  %501 = vmatprep.mubr.msk.bf16.mxu1 %vm628_vm0, %v627_v0  ;;  %v535_v6 = vld [vmem:[%s781_s0] sm:$0xff]   ;;  %v538_v7 = vld [vmem:[#allocation4 + $0x10] sm:$0xff]   ;;  %v539_v8 = vld [vmem:[#allocation4 + $0x18] sm:$0xff]  }
  0x39   :  { %476 = vmatpush3.bf16.msra.mxu0 %v532_v1  ;;  %486 = vmatpush3.bf16.msra.mxu1 %v536_v3  ;;  %v540_v9 = vld [vmem:[#allocation4 + $0x20] sm:$0xff]   ;;  %v541_v10 = vld [vmem:[#allocation4 + $0x28] sm:$0xff]   ;;  %v542_v11 = vld [vmem:[#allocation4 + $0x30] sm:$0xff]  }
  0x3a   :  { %477 = vmatprep.subr.bf16.mxu0 %v627_v0  ;;  %487 = vmatprep.subr.bf16.mxu1 %v627_v0  ;;  %v543_v12 = vld [vmem:[#allocation4 + $0x38] sm:$0xff]   ;;  %v544_v13 = vld [vmem:[%s786_s5] sm:$0xff]   ;;  %v545_v14 = vld [vmem:[%s786_s5 + $0x8] sm:$0xff]  }
  0x3b   :  { %v546_v15 = vld [vmem:[%s786_s5 + $0x10] sm:$0xff]   ;;  %v547_v16 = vld [vmem:[%s786_s5 + $0x18] sm:$0xff]   ;;  %v548_v17 = vld [vmem:[%s786_s5 + $0x20] sm:$0xff]  }
  0x3c   :  { %v549_v18 = vld [vmem:[%s786_s5 + $0x28] sm:$0xff]   ;;  %v411_v19 = vld [vmem:[%s783_s2] ss:$0 sm:$0xff]  ;;  %v550_v29 = vld [vmem:[%s786_s5 + $0x30] sm:$0xff]  }
  0x3d   :  { %478 = vmatpush3.bf16.msra.mxu0 %v533_v2  ;;  %488 = vmatpush3.bf16.msra.mxu1 %v537_v5  ;;  %v551_v30 = vld [vmem:[%s786_s5 + $0x38] sm:$0xff]   ;;  %v417_v31 = vld [vmem:[%s785_s4] ss:$0 sm:$0xff] }
  0x3e   :  { %479 = vmatprep.subr.bf16.mxu0 %v627_v0  ;;  %489 = vmatprep.subr.bf16.mxu1 %v627_v0  ;;  %v428_v42 = vld [vmem:[#allocation6] ss:$0 sm:$0xff] }
  0x41   :  { %480 = vmatpush3.bf16.msra.mxu0 %v534_v4  ;;  %490 = vmatpush3.bf16.msra.mxu1 %v538_v7 }
  0x42   :  { %505 = vmatprep.subr.bf16.mxu0 %v627_v0  ;;  %491 = vmatprep.subr.bf16.mxu1 %v627_v0 }
  0x44   :  { %482 = vmatmul.mubr.msk.bf16.vlgmr.msra.gmra.mrb[0].mxu0 %vm106_vm1, %v535_v6 }
  0x45   :  { %521 = vmatprep.mubr.msk.bf16.mxu0 %vm628_vm0, %v627_v0  ;;  %492 = vmatpush3.bf16.msra.mxu1 %v539_v8 }
  0x46   :  { %493 = vmatprep.subr.bf16.mxu1 %v627_v0  ;;  %506 = vmatpush3.bf16.msra.mxu0 %v544_v13 }
  0x47   :  { %507 = vmatprep.subr.bf16.mxu0 %v627_v0 }
  0x49   :  { %494 = vmatpush3.bf16.msra.mxu1 %v540_v9 }
  0x4a   :  { %495 = vmatprep.subr.bf16.mxu1 %v627_v0  ;;  %508 = vmatpush3.bf16.msra.mxu0 %v545_v14 }
  0x4b   :  { %509 = vmatprep.subr.bf16.mxu0 %v627_v0 }
  0x4d   :  { %496 = vmatpush3.bf16.msra.mxu1 %v541_v10 }
  0x4e   :  { %497 = vmatprep.subr.bf16.mxu1 %v627_v0  ;;  %510 = vmatpush3.bf16.msra.mxu0 %v546_v15 }
  0x4f   :  { %511 = vmatprep.subr.bf16.mxu0 %v627_v0 }
  0x51   :  { %498 = vmatpush3.bf16.msra.mxu1 %v542_v11 }
  0x52   :  { %499 = vmatprep.subr.bf16.mxu1 %v627_v0  ;;  %512 = vmatpush3.bf16.msra.mxu0 %v547_v16 }
  0x53   :  { %513 = vmatprep.subr.bf16.mxu0 %v627_v0 }
  0x55   :  { %500 = vmatpush3.bf16.msra.mxu1 %v543_v12 }
  0x56   :  { %514 = vmatpush3.bf16.msra.mxu0 %v548_v17 }
  0x57   :  { %515 = vmatprep.subr.bf16.mxu0 %v627_v0 }
  0x5a   :  { %516 = vmatpush3.bf16.msra.mxu0 %v549_v18 }
  0x5b   :  { %517 = vmatprep.subr.bf16.mxu0 %v627_v0 }
  0x5e   :  { %518 = vmatpush3.bf16.msra.mxu0 %v550_v29 }
  0x5f   :  { %519 = vmatprep.subr.bf16.mxu0 %v627_v0 }
  0x62   :  { %520 = vmatpush3.bf16.msra.mxu0 %v551_v30 }
 0x117   :  { %v144_v20 = vpop.f32.mrb[0].mxu0 }
 0x118   :  { %v145_v21 = vadd.f32 %v411_v19, %v144_v20  ;;  %v483_v22 = vpop.f32.mrb[1].mxu0 }
 0x119   :  { %v147_v23 = vpop.f32.mrb[2].mxu0 }
 0x11a   :  { %v148_v24 = vadd.f32 %v411_v19, %v147_v23  ;;  %v484_v25 = vpop.f32.mrb[3].mxu0  ;;  %v151_v26 = vmax.f32 %v145_v21, 0.0 }
 0x11c   :  { %v152_v27 = vmax.f32 %v148_v24, 0.0 }
 0x11e   :  { %v153_v28 = vpack.c.bf16 %v152_v27, %v151_v26 }
 0x120   :  { %502 = vmatmul.mubr.bf16.vlgmr.msra.gmra.mrb[0].mxu1 %v153_v28 }
 0x1f3   :  { %v259_v32 = vpop.f32.mrb[0].mxu1 }
 0x1f4   :  { %v260_v33 = vadd.f32 %v417_v31, %v259_v32  ;;  %v503_v34 = vpop.f32.mrb[1].mxu1 }
 0x1f5   :  { %v262_v35 = vpop.f32.mrb[2].mxu1 }
 0x1f6   :  { %v263_v36 = vadd.f32 %v417_v31, %v262_v35  ;;  %v504_v37 = vpop.f32.mrb[3].mxu1  ;;  %v276_v38 = vmax.f32 %v260_v33, 0.0 }
 0x1f8   :  { %v446_v39 = vpack.c.bf16 %v263_v36, %v260_v33  ;;  %v277_v40 = vmax.f32 %v263_v36, 0.0 }
 0x1fa   :  { %447 = vst [vmem:[%s788_s7] sm:$0xff] %v446_v39   ;;  %v278_v41 = vpack.c.bf16 %v277_v40, %v276_v38 }
 0x1fc   :  { %522 = vmatmul.mubr.bf16.vlgmr.msra.gmra.mrb[4].mxu0 %v278_v41 }
 0x2cf   :  { %v384_v43 = vpop.f32.mrb[4].mxu0 }
 0x2d0   :  { %v523_v44 = vpop.f32.mrb[5].mxu0  ;;  %v385_v46 = vadd.f32 %v428_v42, %v384_v43 }
 0x2d1   :  { %v387_v45 = vpop.f32.mrb[6].mxu0 }
 0x2d2   :  { %v388_v47 = vadd.f32 %v428_v42, %v387_v45  ;;  %v524_v48 = vpop.f32.mrb[7].mxu0 }
 0x2d4   :  { %v451_v49 = vpack.c.bf16 %v388_v47, %v385_v46 }
 0x2d6   :  { %452 = vst [vmem:[%s789_s8] sm:$0xff] %v451_v49  }
 0x2d7   :  { %409 = vsyncpa [#allocation3], 1 }
 0x2d8   :  { %410 = vsyncpa [#allocation5], 1 }

</bundles_post_ra>
